<compile_context>
chip_gen: v5e
topology: v5e:2x2
jax: 0.10.0
libtpu: 0.0.40
codegen_flags: <defaults>
</compile_context>

<pallas_src>
import numpy as np
import jax
import jax.numpy as jnp
from jax.experimental import pallas as pl
from jax.experimental.pallas import tpu as pltpu

# Architecture constants implied by the PyTorch module (input 1x32x32).
C1, C2, KK = 6, 16, 3
H1P = 15                  # conv1 map after 2x2/2 max-pool: 15 x 15
SP1 = H1P * H1P           # 225
CHUNK1 = 256              # SP1 padded to a lane-aligned chunk
H2P = 6                   # conv2 map after 2x2/2 max-pool: 6 x 6
SP2 = H2P * H2P           # 36
POOL2_CHUNK = 128         # SP2 padded to a lane-aligned chunk
Q2 = 192                  # conv2 columns computed (pool only needs flat idx <= 176)
FLAT = C2 * SP2           # 576
FC1, FC2, FC3 = 120, 84, 2
OUT_PAD = 128             # fc3 output padded to one full lane tile


# ------------------------------ fused kernel --------------------------------

def _net_kernel(p1_ref, w1_ref, b1_ref, w2_ref, b2_ref, ssel_ref,
                f1w_ref, f1b_ref, f2w_ref, f2b_ref, f3w_ref, f3b_ref, o_ref):
    # ---- conv1 at all 4 pool candidates: one bf16 MXU dot (6,9)@(9,1024) ----
    p1 = p1_ref[0]                                                     # (9, 1024) bf16
    y1 = jnp.dot(w1_ref[...], p1, preferred_element_type=jnp.float32)  # (6, 1024)
    d1 = jnp.maximum(jnp.maximum(y1[:, 0 * CHUNK1:1 * CHUNK1],
                                 y1[:, 1 * CHUNK1:2 * CHUNK1]),
                     jnp.maximum(y1[:, 2 * CHUNK1:3 * CHUNK1],
                                 y1[:, 3 * CHUNK1:4 * CHUNK1]))
    # max / +per-channel-bias / relu commute, so bias+relu is applied once.
    a1 = jnp.maximum(d1 + b1_ref[...], 0.0)          # (6, 256); cols 0..224 valid

    # ---- conv2: 9 taps fused into a single K=54 dot -------------------------
    taps = []
    for ky in range(KK):
        for kx in range(KK):
            off = ky * H1P + kx                       # lane shift of the tap
            taps.append(a1[:, off:off + Q2])          # (6, 192), stays in cols <= 223
    b2in = jnp.concatenate(taps, axis=0).astype(jnp.bfloat16)             # (54, 192)
    psum = jnp.dot(w2_ref[...], b2in, preferred_element_type=jnp.float32)  # (16, 192)

    # ---- pool2: per-sample 0/1 selection matmul -> 4 aligned 128-chunks -----
    psel = jnp.dot(psum.astype(jnp.bfloat16), ssel_ref[...],
                   preferred_element_type=jnp.float32)                    # (16, 512)
    d2 = jnp.maximum(jnp.maximum(psel[:, 0 * POOL2_CHUNK:1 * POOL2_CHUNK],
                                 psel[:, 1 * POOL2_CHUNK:2 * POOL2_CHUNK]),
                     jnp.maximum(psel[:, 2 * POOL2_CHUNK:3 * POOL2_CHUNK],
                                 psel[:, 3 * POOL2_CHUNK:4 * POOL2_CHUNK]))
    a2 = jnp.maximum(d2 + b2_ref[...], 0.0)           # (16, 128); cols 0..35 valid

    # ---- channel-major flatten (torch view(-1, 576)), kept in vregs ---------
    flat = jnp.concatenate([a2[c:c + 1, 0:SP2] for c in range(C2)], axis=1)  # (1, 576)

    # ---- MLP: fc1 -> relu -> fc2 -> relu -> fc3 (padded to 128 lanes) -------
    h = jnp.dot(flat.astype(jnp.bfloat16), f1w_ref[...],
                preferred_element_type=jnp.float32) + f1b_ref[...]
    h = jnp.maximum(h, 0.0)
    h = jnp.dot(h.astype(jnp.bfloat16), f2w_ref[...],
                preferred_element_type=jnp.float32) + f2b_ref[...]
    h = jnp.maximum(h, 0.0)
    logits = jnp.dot(h.astype(jnp.bfloat16), f3w_ref[...],
                     preferred_element_type=jnp.float32) + f3b_ref[...]     # (1, 128)
    o_ref[0] = jnp.broadcast_to(logits, (8, OUT_PAD))


# ------------------------------- JAX glue -----------------------------------

def _build_conv1_patches(x):
    """(N, 32, 32) f32 -> (N, 9, 4*CHUNK1) bf16 im2col patches.

    Columns: 4 pool-candidate chunks (dy, dx), each CHUNK1(=256) lanes wide;
    inside a chunk, column = y1*15 + x1 (cols 225..255 zero pad).
    Rows: tap index ky*3 + kx.
    """
    n = x.shape[0]
    chunks = []
    for dy in range(2):
        for dx in range(2):
            taps = []
            for ky in range(KK):
                for kx in range(KK):
                    sl = x[:, dy + ky: dy + ky + 2 * H1P - 1: 2,
                           dx + kx: dx + kx + 2 * H1P - 1: 2]        # (N, 15, 15)
                    taps.append(sl.reshape(n, SP1))
            t = jnp.stack(taps, axis=1)                              # (N, 9, 225)
            chunks.append(jnp.pad(t, ((0, 0), (0, 0), (0, CHUNK1 - SP1))))
    return jnp.concatenate(chunks, axis=2).astype(jnp.bfloat16)      # (N, 9, 1024)


def _build_pool2_select():
    """Per-sample constant (192, 512) 0/1 matrix mapping conv2 columns to the
    four 128-aligned pool-candidate chunks (36 valid columns each)."""
    s = np.zeros((Q2, 4 * POOL2_CHUNK), np.float32)
    for dy in range(2):
        for dx in range(2):
            p = dy * 2 + dx
            for y2 in range(H2P):
                for x2 in range(H2P):
                    src = (2 * y2 + dy) * H1P + (2 * x2 + dx)        # <= 176
                    s[src, p * POOL2_CHUNK + y2 * H2P + x2] = 1.0
    return jnp.asarray(s, dtype=jnp.bfloat16)


def prepare_params(params):
    """One-time re-layout / bf16 cast of the PyTorch-style parameters."""
    f3w = jnp.zeros((FC2, OUT_PAD), jnp.float32).at[:, :FC3].set(params["fc3_w"].T)
    f3b = jnp.zeros((1, OUT_PAD), jnp.float32).at[:, :FC3].set(params["fc3_b"][None, :])
    return {
        "w1": params["conv1_w"].reshape(C1, KK * KK).astype(jnp.bfloat16),        # (6, 9)
        "b1": params["conv1_b"].reshape(C1, 1).astype(jnp.float32),
        # w2 folded to (16, 54); row order (co), col order (ky*3+kx)*6 + ci.
        "w2": jnp.transpose(params["conv2_w"], (0, 2, 3, 1))
                 .reshape(C2, KK * KK * C1).astype(jnp.bfloat16),
        "b2": params["conv2_b"].reshape(C2, 1).astype(jnp.float32),
        "s_sel": _build_pool2_select(),
        "fc1w": params["fc1_w"].T.astype(jnp.bfloat16),                           # (576, 120)
        "fc1b": params["fc1_b"].reshape(1, FC1).astype(jnp.float32),
        "fc2w": params["fc2_w"].T.astype(jnp.bfloat16),                           # (120, 84)
        "fc2b": params["fc2_b"].reshape(1, FC2).astype(jnp.float32),
        "fc3w": f3w.astype(jnp.bfloat16),                                         # (84, 128)
        "fc3b": f3b,
    }


def net_forward(x_nchw, kp):
    n = x_nchw.shape[0]
    # Patches emitted in bf16 (halves the largest HBM->VMEM transfer).  For
    # very large inputs this construction could move in-kernel instead.
    p1 = _build_conv1_patches(x_nchw.astype(jnp.float32)[:, 0])     # (N, 9, 1024) bf16

    param_order = ("w1", "b1", "w2", "b2", "s_sel",
                   "fc1w", "fc1b", "fc2w", "fc2b", "fc3w", "fc3b")
    param_args = [kp[k] for k in param_order]

    in_specs = [pl.BlockSpec((1, KK * KK, 4 * CHUNK1), lambda i: (i, 0, 0))]
    # Small constants: full-array blocks, constant index -> DMA'd once, resident.
    in_specs += [pl.BlockSpec(a.shape, lambda i: (0, 0)) for a in param_args]

    out = pl.pallas_call(
        _net_kernel,
        out_shape=jax.ShapeDtypeStruct((n, 8, OUT_PAD), jnp.float32),
        grid=(n,),
        in_specs=in_specs,
        out_specs=pl.BlockSpec((1, 8, OUT_PAD), lambda i: (i, 0, 0)),
        compiler_params=pltpu.CompilerParams(
            dimension_semantics=("parallel",),
            vmem_limit_bytes=32 * 1024 * 1024),
    )(p1, *param_args)
    return out[:, 0, :FC3]


# --------------------------- reference / params ------------------------------

def init_params(key):
    ks = jax.random.split(key, 10)
    s = 0.05
    return {
        "conv1_w": s * jax.random.normal(ks[0], (6, 1, 3, 3), jnp.float32),
        "conv1_b": s * jax.random.normal(ks[1], (6,), jnp.float32),
        "conv2_w": s * jax.random.normal(ks[2], (16, 6, 3, 3), jnp.float32),
        "conv2_b": s * jax.random.normal(ks[3], (16,), jnp.float32),
        "fc1_w": s * jax.random.normal(ks[4], (120, 16 * 6 * 6), jnp.float32),
        "fc1_b": s * jax.random.normal(ks[5], (120,), jnp.float32),
        "fc2_w": s * jax.random.normal(ks[6], (84, 120), jnp.float32),
        "fc2_b": s * jax.random.normal(ks[7], (84,), jnp.float32),
        "fc3_w": s * jax.random.normal(ks[8], (2, 84), jnp.float32),
        "fc3_b": s * jax.random.normal(ks[9], (2,), jnp.float32),
    }


def _reference_forward(x, params):
    """Pure-JAX reference matching the PyTorch module semantics."""
    dn = ("NCHW", "OIHW", "NCHW")
    y = jax.lax.conv_general_dilated(x, params["conv1_w"], (1, 1), "VALID",
                                     dimension_numbers=dn)
    y = jnp.maximum(y + params["conv1_b"].reshape(1, C1, 1, 1), 0.0)
    y = jax.lax.reduce_window(y, -jnp.inf, jax.lax.max,
                              (1, 1, 2, 2), (1, 1, 2, 2), "VALID")
    y = jax.lax.conv_general_dilated(y, params["conv2_w"], (1, 1), "VALID",
                                     dimension_numbers=dn)
    y = jnp.maximum(y + params["conv2_b"].reshape(1, C2, 1, 1), 0.0)
    y = jax.lax.reduce_window(y, -jnp.inf, jax.lax.max,
                              (1, 1, 2, 2), (1, 1, 2, 2), "VALID")
    flat = y.reshape(y.shape[0], -1)
    h = jnp.maximum(flat @ params["fc1_w"].T + params["fc1_b"], 0.0)
    h = jnp.maximum(h @ params["fc2_w"].T + params["fc2_b"], 0.0)
    return h @ params["fc3_w"].T + params["fc3_b"]


if __name__ == "__main__":
    key = jax.random.PRNGKey(0)
    k_x, k_p = jax.random.split(key)
    # Input implied by fc1 = 16*6*6: (N, 1, 32, 32) NCHW.
    x = jax.random.normal(k_x, (2, 1, 32, 32), jnp.float32)
    params = init_params(k_p)

    kparams = prepare_params(params)
    fwd = jax.jit(net_forward)
    out = jax.block_until_ready(fwd(x, kparams))
    assert out.shape == (2, FC3), out.shape

    ref = jax.block_until_ready(_reference_forward(x, params))
    np.testing.assert_allclose(np.asarray(out), np.asarray(ref),
                               rtol=3e-2, atol=3e-3)

    print("KERNEL_OK")
</pallas_src>

<mosaic_0001>
module attributes {stable_mosaic.version = 11 : i64} {
  func.func @_net_kernel(%arg0: i32, %arg1: memref<1x9x1024xbf16, #tpu.memory_space<vmem>>, %arg2: memref<6x9xbf16, #tpu.memory_space<vmem>>, %arg3: memref<6x1xf32, #tpu.memory_space<vmem>>, %arg4: memref<16x54xbf16, #tpu.memory_space<vmem>>, %arg5: memref<16x1xf32, #tpu.memory_space<vmem>>, %arg6: memref<192x512xbf16, #tpu.memory_space<vmem>>, %arg7: memref<576x120xbf16, #tpu.memory_space<vmem>>, %arg8: memref<1x120xf32, #tpu.memory_space<vmem>>, %arg9: memref<120x84xbf16, #tpu.memory_space<vmem>>, %arg10: memref<1x84xf32, #tpu.memory_space<vmem>>, %arg11: memref<84x128xbf16, #tpu.memory_space<vmem>>, %arg12: memref<1x128xf32, #tpu.memory_space<vmem>>, %arg13: memref<1x8x128xf32, #tpu.memory_space<vmem>>) attributes {dimension_semantics = [#tpu.dimension_semantics<parallel>], iteration_bounds = array<i64: 2>, scalar_prefetch = 0 : i64, scratch_operands = 0 : i64, tpu.core_type = #tpu.core_type<tc>, window_params = [{transform_indices = @transform_0, window_bounds = array<i64: 1, 9, 1024>}, {pipeline_mode = #tpu.pipeline_mode<synchronous>, transform_indices = @transform_1, window_bounds = array<i64: 6, 9>}, {pipeline_mode = #tpu.pipeline_mode<synchronous>, transform_indices = @transform_2, window_bounds = array<i64: 6, 1>}, {pipeline_mode = #tpu.pipeline_mode<synchronous>, transform_indices = @transform_3, window_bounds = array<i64: 16, 54>}, {pipeline_mode = #tpu.pipeline_mode<synchronous>, transform_indices = @transform_4, window_bounds = array<i64: 16, 1>}, {pipeline_mode = #tpu.pipeline_mode<synchronous>, transform_indices = @transform_5, window_bounds = array<i64: 192, 512>}, {pipeline_mode = #tpu.pipeline_mode<synchronous>, transform_indices = @transform_6, window_bounds = array<i64: 576, 120>}, {pipeline_mode = #tpu.pipeline_mode<synchronous>, transform_indices = @transform_7, window_bounds = array<i64: 1, 120>}, {pipeline_mode = #tpu.pipeline_mode<synchronous>, transform_indices = @transform_8, window_bounds = array<i64: 120, 84>}, {pipeline_mode = #tpu.pipeline_mode<synchronous>, transform_indices = @transform_9, window_bounds = array<i64: 1, 84>}, {pipeline_mode = #tpu.pipeline_mode<synchronous>, transform_indices = @transform_10, window_bounds = array<i64: 84, 128>}, {pipeline_mode = #tpu.pipeline_mode<synchronous>, transform_indices = @transform_11, window_bounds = array<i64: 1, 128>}, {transform_indices = @transform_12, window_bounds = array<i64: 1, 8, 128>}]} {
    %c0 = arith.constant 0 : index
    %c0_0 = arith.constant 0 : index
    %c0_1 = arith.constant 0 : index
    %0 = vector.load %arg1[%c0, %c0_0, %c0_1] : memref<1x9x1024xbf16, #tpu.memory_space<vmem>>, vector<1x9x1024xbf16>
    %1 = vector.shape_cast %0 : vector<1x9x1024xbf16> to vector<9x1024xbf16>
    %c0_2 = arith.constant 0 : index
    %c0_3 = arith.constant 0 : index
    %2 = vector.load %arg2[%c0_2, %c0_3] : memref<6x9xbf16, #tpu.memory_space<vmem>>, vector<6x9xbf16>
    %cst = arith.constant dense<0.000000e+00> : vector<6x1024xf32>
    %3 = tpu.matmul %2, %1, %cst {dimension_numbers = #tpu.dot_dimension_numbers<[1], [0], [0], [1], [0, 0, 1, 1], [], []>} : vector<6x9xbf16>, vector<9x1024xbf16>, vector<6x1024xf32> -> vector<6x1024xf32>
    %4 = vector.extract_strided_slice %3 {offsets = [0, 0], sizes = [6, 256], strides = [1, 1]} : vector<6x1024xf32> to vector<6x256xf32>
    %5 = vector.extract_strided_slice %3 {offsets = [0, 256], sizes = [6, 256], strides = [1, 1]} : vector<6x1024xf32> to vector<6x256xf32>
    %6 = arith.maximumf %4, %5 : vector<6x256xf32>
    %7 = vector.extract_strided_slice %3 {offsets = [0, 512], sizes = [6, 256], strides = [1, 1]} : vector<6x1024xf32> to vector<6x256xf32>
    %8 = vector.extract_strided_slice %3 {offsets = [0, 768], sizes = [6, 256], strides = [1, 1]} : vector<6x1024xf32> to vector<6x256xf32>
    %9 = arith.maximumf %7, %8 : vector<6x256xf32>
    %10 = arith.maximumf %6, %9 : vector<6x256xf32>
    %c0_4 = arith.constant 0 : index
    %c0_5 = arith.constant 0 : index
    %11 = vector.load %arg3[%c0_4, %c0_5] : memref<6x1xf32, #tpu.memory_space<vmem>>, vector<6x1xf32>
    %12 = vector.broadcast %11 : vector<6x1xf32> to vector<6x256xf32>
    %13 = arith.addf %10, %12 : vector<6x256xf32>
    %cst_6 = arith.constant 0.000000e+00 : f32
    %14 = vector.broadcast %cst_6 : f32 to vector<6x256xf32>
    %15 = arith.maximumf %13, %14 : vector<6x256xf32>
    %16 = vector.extract_strided_slice %15 {offsets = [0, 0], sizes = [6, 192], strides = [1, 1]} : vector<6x256xf32> to vector<6x192xf32>
    %17 = vector.extract_strided_slice %15 {offsets = [0, 1], sizes = [6, 192], strides = [1, 1]} : vector<6x256xf32> to vector<6x192xf32>
    %18 = vector.extract_strided_slice %15 {offsets = [0, 2], sizes = [6, 192], strides = [1, 1]} : vector<6x256xf32> to vector<6x192xf32>
    %19 = vector.extract_strided_slice %15 {offsets = [0, 15], sizes = [6, 192], strides = [1, 1]} : vector<6x256xf32> to vector<6x192xf32>
    %20 = vector.extract_strided_slice %15 {offsets = [0, 16], sizes = [6, 192], strides = [1, 1]} : vector<6x256xf32> to vector<6x192xf32>
    %21 = vector.extract_strided_slice %15 {offsets = [0, 17], sizes = [6, 192], strides = [1, 1]} : vector<6x256xf32> to vector<6x192xf32>
    %22 = vector.extract_strided_slice %15 {offsets = [0, 30], sizes = [6, 192], strides = [1, 1]} : vector<6x256xf32> to vector<6x192xf32>
    %23 = vector.extract_strided_slice %15 {offsets = [0, 31], sizes = [6, 192], strides = [1, 1]} : vector<6x256xf32> to vector<6x192xf32>
    %24 = vector.extract_strided_slice %15 {offsets = [0, 32], sizes = [6, 192], strides = [1, 1]} : vector<6x256xf32> to vector<6x192xf32>
    %25 = tpu.concatenate %16, %17, %18, %19, %20, %21, %22, %23, %24 in 0 : vector<6x192xf32>, vector<6x192xf32>, vector<6x192xf32>, vector<6x192xf32>, vector<6x192xf32>, vector<6x192xf32>, vector<6x192xf32>, vector<6x192xf32>, vector<6x192xf32> -> vector<54x192xf32>
    %26 = arith.truncf %25 : vector<54x192xf32> to vector<54x192xbf16>
    %c0_7 = arith.constant 0 : index
    %c0_8 = arith.constant 0 : index
    %27 = vector.load %arg4[%c0_7, %c0_8] : memref<16x54xbf16, #tpu.memory_space<vmem>>, vector<16x54xbf16>
    %cst_9 = arith.constant dense<0.000000e+00> : vector<16x192xf32>
    %28 = tpu.matmul %27, %26, %cst_9 {dimension_numbers = #tpu.dot_dimension_numbers<[1], [0], [0], [1], [0, 0, 1, 1], [], []>} : vector<16x54xbf16>, vector<54x192xbf16>, vector<16x192xf32> -> vector<16x192xf32>
    %29 = arith.truncf %28 : vector<16x192xf32> to vector<16x192xbf16>
    %c0_10 = arith.constant 0 : index
    %c0_11 = arith.constant 0 : index
    %30 = vector.load %arg6[%c0_10, %c0_11] : memref<192x512xbf16, #tpu.memory_space<vmem>>, vector<192x512xbf16>
    %cst_12 = arith.constant dense<0.000000e+00> : vector<16x512xf32>
    %31 = tpu.matmul %29, %30, %cst_12 {dimension_numbers = #tpu.dot_dimension_numbers<[1], [0], [0], [1], [0, 0, 1, 1], [], []>} : vector<16x192xbf16>, vector<192x512xbf16>, vector<16x512xf32> -> vector<16x512xf32>
    %32 = vector.extract_strided_slice %31 {offsets = [0, 0], sizes = [16, 128], strides = [1, 1]} : vector<16x512xf32> to vector<16x128xf32>
    %33 = vector.extract_strided_slice %31 {offsets = [0, 128], sizes = [16, 128], strides = [1, 1]} : vector<16x512xf32> to vector<16x128xf32>
    %34 = arith.maximumf %32, %33 : vector<16x128xf32>
    %35 = vector.extract_strided_slice %31 {offsets = [0, 256], sizes = [16, 128], strides = [1, 1]} : vector<16x512xf32> to vector<16x128xf32>
    %36 = vector.extract_strided_slice %31 {offsets = [0, 384], sizes = [16, 128], strides = [1, 1]} : vector<16x512xf32> to vector<16x128xf32>
    %37 = arith.maximumf %35, %36 : vector<16x128xf32>
    %38 = arith.maximumf %34, %37 : vector<16x128xf32>
    %c0_13 = arith.constant 0 : index
    %c0_14 = arith.constant 0 : index
    %39 = vector.load %arg5[%c0_13, %c0_14] : memref<16x1xf32, #tpu.memory_space<vmem>>, vector<16x1xf32>
    %40 = vector.broadcast %39 : vector<16x1xf32> to vector<16x128xf32>
    %41 = arith.addf %38, %40 : vector<16x128xf32>
    %cst_15 = arith.constant 0.000000e+00 : f32
    %42 = vector.broadcast %cst_15 : f32 to vector<16x128xf32>
    %43 = arith.maximumf %41, %42 : vector<16x128xf32>
    %44 = vector.extract_strided_slice %43 {offsets = [0, 0], sizes = [1, 36], strides = [1, 1]} : vector<16x128xf32> to vector<1x36xf32>
    %45 = vector.extract_strided_slice %43 {offsets = [1, 0], sizes = [1, 36], strides = [1, 1]} : vector<16x128xf32> to vector<1x36xf32>
    %46 = vector.extract_strided_slice %43 {offsets = [2, 0], sizes = [1, 36], strides = [1, 1]} : vector<16x128xf32> to vector<1x36xf32>
    %47 = vector.extract_strided_slice %43 {offsets = [3, 0], sizes = [1, 36], strides = [1, 1]} : vector<16x128xf32> to vector<1x36xf32>
    %48 = vector.extract_strided_slice %43 {offsets = [4, 0], sizes = [1, 36], strides = [1, 1]} : vector<16x128xf32> to vector<1x36xf32>
    %49 = vector.extract_strided_slice %43 {offsets = [5, 0], sizes = [1, 36], strides = [1, 1]} : vector<16x128xf32> to vector<1x36xf32>
    %50 = vector.extract_strided_slice %43 {offsets = [6, 0], sizes = [1, 36], strides = [1, 1]} : vector<16x128xf32> to vector<1x36xf32>
    %51 = vector.extract_strided_slice %43 {offsets = [7, 0], sizes = [1, 36], strides = [1, 1]} : vector<16x128xf32> to vector<1x36xf32>
    %52 = vector.extract_strided_slice %43 {offsets = [8, 0], sizes = [1, 36], strides = [1, 1]} : vector<16x128xf32> to vector<1x36xf32>
    %53 = vector.extract_strided_slice %43 {offsets = [9, 0], sizes = [1, 36], strides = [1, 1]} : vector<16x128xf32> to vector<1x36xf32>
    %54 = vector.extract_strided_slice %43 {offsets = [10, 0], sizes = [1, 36], strides = [1, 1]} : vector<16x128xf32> to vector<1x36xf32>
    %55 = vector.extract_strided_slice %43 {offsets = [11, 0], sizes = [1, 36], strides = [1, 1]} : vector<16x128xf32> to vector<1x36xf32>
    %56 = vector.extract_strided_slice %43 {offsets = [12, 0], sizes = [1, 36], strides = [1, 1]} : vector<16x128xf32> to vector<1x36xf32>
    %57 = vector.extract_strided_slice %43 {offsets = [13, 0], sizes = [1, 36], strides = [1, 1]} : vector<16x128xf32> to vector<1x36xf32>
    %58 = vector.extract_strided_slice %43 {offsets = [14, 0], sizes = [1, 36], strides = [1, 1]} : vector<16x128xf32> to vector<1x36xf32>
    %59 = vector.extract_strided_slice %43 {offsets = [15, 0], sizes = [1, 36], strides = [1, 1]} : vector<16x128xf32> to vector<1x36xf32>
    %60 = tpu.concatenate %44, %45, %46, %47, %48, %49, %50, %51, %52, %53, %54, %55, %56, %57, %58, %59 in 1 : vector<1x36xf32>, vector<1x36xf32>, vector<1x36xf32>, vector<1x36xf32>, vector<1x36xf32>, vector<1x36xf32>, vector<1x36xf32>, vector<1x36xf32>, vector<1x36xf32>, vector<1x36xf32>, vector<1x36xf32>, vector<1x36xf32>, vector<1x36xf32>, vector<1x36xf32>, vector<1x36xf32>, vector<1x36xf32> -> vector<1x576xf32>
    %61 = arith.truncf %60 : vector<1x576xf32> to vector<1x576xbf16>
    %c0_16 = arith.constant 0 : index
    %c0_17 = arith.constant 0 : index
    %62 = vector.load %arg7[%c0_16, %c0_17] : memref<576x120xbf16, #tpu.memory_space<vmem>>, vector<576x120xbf16>
    %cst_18 = arith.constant dense<0.000000e+00> : vector<1x120xf32>
    %63 = tpu.matmul %61, %62, %cst_18 {dimension_numbers = #tpu.dot_dimension_numbers<[1], [0], [0], [1], [0, 0, 1, 1], [], []>} : vector<1x576xbf16>, vector<576x120xbf16>, vector<1x120xf32> -> vector<1x120xf32>
    %c0_19 = arith.constant 0 : index
    %c0_20 = arith.constant 0 : index
    %64 = vector.load %arg8[%c0_19, %c0_20] : memref<1x120xf32, #tpu.memory_space<vmem>>, vector<1x120xf32>
    %65 = arith.addf %63, %64 : vector<1x120xf32>
    %cst_21 = arith.constant 0.000000e+00 : f32
    %66 = vector.broadcast %cst_21 : f32 to vector<1x120xf32>
    %67 = arith.maximumf %65, %66 : vector<1x120xf32>
    %68 = arith.truncf %67 : vector<1x120xf32> to vector<1x120xbf16>
    %c0_22 = arith.constant 0 : index
    %c0_23 = arith.constant 0 : index
    %69 = vector.load %arg9[%c0_22, %c0_23] : memref<120x84xbf16, #tpu.memory_space<vmem>>, vector<120x84xbf16>
    %cst_24 = arith.constant dense<0.000000e+00> : vector<1x84xf32>
    %70 = tpu.matmul %68, %69, %cst_24 {dimension_numbers = #tpu.dot_dimension_numbers<[1], [0], [0], [1], [0, 0, 1, 1], [], []>} : vector<1x120xbf16>, vector<120x84xbf16>, vector<1x84xf32> -> vector<1x84xf32>
    %c0_25 = arith.constant 0 : index
    %c0_26 = arith.constant 0 : index
    %71 = vector.load %arg10[%c0_25, %c0_26] : memref<1x84xf32, #tpu.memory_space<vmem>>, vector<1x84xf32>
    %72 = arith.addf %70, %71 : vector<1x84xf32>
    %cst_27 = arith.constant 0.000000e+00 : f32
    %73 = vector.broadcast %cst_27 : f32 to vector<1x84xf32>
    %74 = arith.maximumf %72, %73 : vector<1x84xf32>
    %75 = arith.truncf %74 : vector<1x84xf32> to vector<1x84xbf16>
    %c0_28 = arith.constant 0 : index
    %c0_29 = arith.constant 0 : index
    %76 = vector.load %arg11[%c0_28, %c0_29] : memref<84x128xbf16, #tpu.memory_space<vmem>>, vector<84x128xbf16>
    %cst_30 = arith.constant dense<0.000000e+00> : vector<1x128xf32>
    %77 = tpu.matmul %75, %76, %cst_30 {dimension_numbers = #tpu.dot_dimension_numbers<[1], [0], [0], [1], [0, 0, 1, 1], [], []>} : vector<1x84xbf16>, vector<84x128xbf16>, vector<1x128xf32> -> vector<1x128xf32>
    %c0_31 = arith.constant 0 : index
    %c0_32 = arith.constant 0 : index
    %78 = vector.load %arg12[%c0_31, %c0_32] : memref<1x128xf32, #tpu.memory_space<vmem>>, vector<1x128xf32>
    %79 = arith.addf %77, %78 : vector<1x128xf32>
    %80 = vector.shape_cast %79 : vector<1x128xf32> to vector<1x128xf32>
    %81 = vector.broadcast %80 : vector<1x128xf32> to vector<8x128xf32>
    %c0_33 = arith.constant 0 : index
    %c0_34 = arith.constant 0 : index
    %c0_35 = arith.constant 0 : index
    %82 = vector.load %arg13[%c0_33, %c0_34, %c0_35] : memref<1x8x128xf32, #tpu.memory_space<vmem>>, vector<1x8x128xf32>
    %83 = vector.shape_cast %82 : vector<1x8x128xf32> to vector<8x128xf32>
    %84 = vector.shape_cast %81 : vector<8x128xf32> to vector<1x8x128xf32>
    tpu.vector_store %arg13[%c0_33, %c0_34, %c0_35], %84 {strides = array<i32>} : memref<1x8x128xf32, #tpu.memory_space<vmem>>, vector<1x8x128xf32>,
    return
  }
  func.func @transform_0(%arg0: i32) -> (i32, i32, i32) {
    %c0_i32 = arith.constant 0 : i32
    %c0_i32_0 = arith.constant 0 : i32
    %c0_i32_1 = arith.constant 0 : i32
    return %arg0, %c0_i32, %c0_i32_0 : i32, i32, i32
  }
  func.func @transform_1(%arg0: i32) -> (i32, i32) {
    %c0_i32 = arith.constant 0 : i32
    %c0_i32_0 = arith.constant 0 : i32
    %c0_i32_1 = arith.constant 0 : i32
    return %c0_i32, %c0_i32_0 : i32, i32
  }
  func.func @transform_2(%arg0: i32) -> (i32, i32) {
    %c0_i32 = arith.constant 0 : i32
    %c0_i32_0 = arith.constant 0 : i32
    %c0_i32_1 = arith.constant 0 : i32
    return %c0_i32, %c0_i32_0 : i32, i32
  }
  func.func @transform_3(%arg0: i32) -> (i32, i32) {
    %c0_i32 = arith.constant 0 : i32
    %c0_i32_0 = arith.constant 0 : i32
    %c0_i32_1 = arith.constant 0 : i32
    return %c0_i32, %c0_i32_0 : i32, i32
  }
  func.func @transform_4(%arg0: i32) -> (i32, i32) {
    %c0_i32 = arith.constant 0 : i32
    %c0_i32_0 = arith.constant 0 : i32
    %c0_i32_1 = arith.constant 0 : i32
    return %c0_i32, %c0_i32_0 : i32, i32
  }
  func.func @transform_5(%arg0: i32) -> (i32, i32) {
    %c0_i32 = arith.constant 0 : i32
    %c0_i32_0 = arith.constant 0 : i32
    %c0_i32_1 = arith.constant 0 : i32
    return %c0_i32, %c0_i32_0 : i32, i32
  }
  func.func @transform_6(%arg0: i32) -> (i32, i32) {
    %c0_i32 = arith.constant 0 : i32
    %c0_i32_0 = arith.constant 0 : i32
    %c0_i32_1 = arith.constant 0 : i32
    return %c0_i32, %c0_i32_0 : i32, i32
  }
  func.func @transform_7(%arg0: i32) -> (i32, i32) {
    %c0_i32 = arith.constant 0 : i32
    %c0_i32_0 = arith.constant 0 : i32
    %c0_i32_1 = arith.constant 0 : i32
    return %c0_i32, %c0_i32_0 : i32, i32
  }
  func.func @transform_8(%arg0: i32) -> (i32, i32) {
    %c0_i32 = arith.constant 0 : i32
    %c0_i32_0 = arith.constant 0 : i32
    %c0_i32_1 = arith.constant 0 : i32
    return %c0_i32, %c0_i32_0 : i32, i32
  }
  func.func @transform_9(%arg0: i32) -> (i32, i32) {
    %c0_i32 = arith.constant 0 : i32
    %c0_i32_0 = arith.constant 0 : i32
    %c0_i32_1 = arith.constant 0 : i32
    return %c0_i32, %c0_i32_0 : i32, i32
  }
  func.func @transform_10(%arg0: i32) -> (i32, i32) {
    %c0_i32 = arith.constant 0 : i32
    %c0_i32_0 = arith.constant 0 : i32
    %c0_i32_1 = arith.constant 0 : i32
    return %c0_i32, %c0_i32_0 : i32, i32
  }
  func.func @transform_11(%arg0: i32) -> (i32, i32) {
    %c0_i32 = arith.constant 0 : i32
    %c0_i32_0 = arith.constant 0 : i32
    %c0_i32_1 = arith.constant 0 : i32
    return %c0_i32, %c0_i32_0 : i32, i32
  }
  func.func @transform_12(%arg0: i32) -> (i32, i32, i32) {
    %c0_i32 = arith.constant 0 : i32
    %c0_i32_0 = arith.constant 0 : i32
    %c0_i32_1 = arith.constant 0 : i32
    return %arg0, %c0_i32, %c0_i32_0 : i32, i32, i32
  }
}

</mosaic_0001>

<bundles_post_ra>
// kernel: net_forward.1
= control target key start
LH: loop header
LB: loop body
LE: loop exit
PB: predicated region body
PF: predicated region fallthrough
CT: control target
= control target key end

     0   :  { %s2556_s21 = smov 0   ;;  %s3129_s0 = inlined_call_operand.vmem [shape: bf16[2,9,1024], index: 0, kind: input, shape index: {}]   ;;  %s3130_s1 = inlined_call_operand.vmem [shape: bf16[6,9], index: 1, kind: input, shape index: {}]   ;;  %s3131_s2 = inlined_call_operand.vmem [shape: f32[6,1], index: 2, kind: input, shape index: {}]   ;;  %s3132_s3 = inlined_call_operand.vmem [shape: bf16[16,54], index: 3, kind: input, shape index: {}]   ;;  %s3133_s4 = inlined_call_operand.vmem [shape: f32[16,1], index: 4, kind: input, shape index: {}]   ;;  %s3134_s5 = inlined_call_operand.vmem [shape: bf16[192,512], index: 5, kind: input, shape index: {}]   ;;  %s3135_s6 = inlined_call_operand.vmem [shape: bf16[576,120], index: 6, kind: input, shape index: {}]   ;;  %s3136_s7 = inlined_call_operand.vmem [shape: f32[1,120], index: 7, kind: input, shape index: {}]   ;;  %s3137_s8 = inlined_call_operand.vmem [shape: bf16[120,84], index: 8, kind: input, shape index: {}]   ;;  %s3138_s9 = inlined_call_operand.vmem [shape: f32[1,84], index: 9, kind: input, shape index: {}]   ;;  %s3139_s10 = inlined_call_operand.vmem [shape: bf16[84,128], index: 10, kind: input, shape index: {}]   ;;  %s3140_s11 = inlined_call_operand.vmem [shape: f32[1,128], index: 11, kind: input, shape index: {}]   ;;  %s3141_s12 = inlined_call_operand.vmem [shape: f32[2,8,128], index: 12, kind: output, shape index: {}]  }
   0x1 LB: > { %s1830_s22 = sadd.s32 4294967295, %s2464_s21   ;;  %p1834_p0 = scmp.ge.s32.totalorder %s2464_s21, 1  ;;  %s2464_s21 = sphi %s2556_s21, %s22_s21  }
   0x2   : > { %p362_p1 = scmp.lt.s32.totalorder %s2464_s21, 3 }
   0x4   : > { %p363_p2 = pnand %p1834_p0, %p362_p1 }
   0x5   : > { %p403_p3 = scmp.lt.s32.totalorder (!%p363_p2), %s1830_s22, 1  ;;  %s2468_s13 = smov (!%p363_p2), 96  }
   0x6   : > { %366 = sbr.rel (%p363_p2) target bundleno = 1192 (0x4a8), region = 68  ;;  %s2469_s14 = smov (!%p363_p2), 97  }
   0x7   : > { %s2470_s15 = smov (!%p363_p2), 111   ;;  %s2471_s16 = smov (!%p363_p2), 113  }
   0x8   : > { %s2472_s17 = smov (!%p363_p2), 126   ;;  %s2473_s18 = smov (!%p363_p2), 98  }
   0x9   : > { %s2475_s24 = smov (!%p363_p2), 112   ;;  %s2476_s29 = smov (!%p363_p2), 108  }
   0xa   : > { %s2477_s30 = smov (!%p363_p2), 72   ;;  %s2482_s19 = smov (!%p363_p2), 12  }
   0xb   : > { %vm458_vm0 = vcmask 1043456   ;;  %s3143_s22 = smov (!%p403_p3, %s1830_s22), 1  ;;  %vm459_vm1 = vcmask 1044480   ;;  %v2466_v0 = vmov 65535   ;;  %v421_v27 = vld [vmem:[%s3130_s1] sm:$0x7] }
   0xc   : > { %v460_v1 = vsel %vm458_vm0, 4294967295, %v2466_v0  ;;  %s2277_s23 = sshll.u32 %s3143_s22, 6  ;;  %vm454_vm2 = vcmask 72704   ;;  %v596_v36 = vld [vmem:[%s3131_s2] sm:$0x3f]  ;;  %v2467_v37 = vmov 0  }
   0xd   : > { %s2571_s26 = scalar_lea.vmem %s3129_s0, %s2277_s23  ;;  %v461_v2 = vsel %vm459_vm1, %v460_v1, 0  ;;  %2416 = vset.pattern.permute.xlu0 %v2467_v37  ;;  %2457 = vset.pattern.permute.xlu1 %v2467_v37  ;;  %s2474_s23 = smov 127   ;;  %vm674_vm3 = vcmask 785408   ;;  %vm711_vm4 = vcmask 1042432   ;;  %v1950_v37 = vld [vmem:[%s3134_s5 + $0x80] sm:$0xf] }
   0xe   : > { %v1840_v3 = vld [vmem:[%s2571_s26] sm:$0xf]  ;;  %v1848_v5 = vld [vmem:[%s2571_s26 + $0x8] sm:$0xf]  ;;  %v2279_v8 = vld [vmem:[%s2571_s26 + $0xc] sm:$0xf]  ;;  %599 = vperm.xlu0 %2416, %v596_v36  }
   0xf   : > { %v2282_v4 = vld [vmem:[%s2571_s26 + $0x1c] sm:$0x10]  ;;  %v2283_v7 = vld [vmem:[%s2571_s26 + $0x24] sm:$0x10]  ;;  %v1850_v9 = vld [vmem:[%s2571_s26 + $0x28] sm:$0x10] }
  0x10   : > { %v1841_v6 = vor.u32 %v2282_v4, %v1840_v3  ;;  %v1849_v10 = vor.u32 %v2283_v7, %v1848_v5  ;;  %v1853_v11 = vor.u32 %v2279_v8, %v1850_v9  ;;  %v2278_v12 = vld [vmem:[%s2571_s26 + $0x4] sm:$0xf]  ;;  %v1864_v14 = vld [vmem:[%s2571_s26 + $0x18] sm:$0xf]  ;;  %v2281_v18 = vld [vmem:[%s2571_s26 + $0x1c] sm:$0xf] }
  0x11   : > { %v1842_v13 = vld [vmem:[%s2571_s26 + $0x20] sm:$0x10]  ;;  %v2285_v17 = vld [vmem:[%s2571_s26 + $0x34] sm:$0x10]  ;;  %v1866_v19 = vld [vmem:[%s2571_s26 + $0x38] sm:$0x10] }
  0x12   : > { %v463_v15 = vand.u32 %v1841_v6, %v461_v2  ;;  %v1845_v16 = vor.u32 %v2278_v12, %v1842_v13  ;;  %v469_v20 = vand.u32 %v1849_v10, %v461_v2  ;;  %v472_v21 = vand.u32 %v1853_v11, %v461_v2  ;;  %v2280_v24 = vld [vmem:[%s2571_s26 + $0x14] sm:$0xf]  ;;  %v1856_v26 = vld [vmem:[%s2571_s26 + $0x10] sm:$0xf]  ;;  %v1158_v11 = vld [vmem:[%s3133_s4] sm:$0xff]  ;;  %s2483_s20 = smov 104  }
  0x13   : > { %v1865_v22 = vor.u32 %v2285_v17, %v1864_v14  ;;  %v1869_v23 = vor.u32 %v2281_v18, %v1866_v19  ;;  %v1858_v25 = vld [vmem:[%s2571_s26 + $0x30] sm:$0x10]  ;;  %v2284_v30 = vld [vmem:[%s2571_s26 + $0x2c] sm:$0x10]  ;;  %v1998_v14 = vld [vmem:[%s3134_s5 + $0xe0] sm:$0xf] }
  0x14   : > { %493 = vmatpush.bf16.msra.mxu1 %v463_v15  ;;  %v466_v28 = vand.u32 %v1845_v16, %v461_v2  ;;  %v1861_v29 = vor.u32 %v2280_v24, %v1858_v25  ;;  %519 = vmatpush.bf16.msra.mxu2 %v469_v20  ;;  %v1857_v33 = vor.u32 %v2284_v30, %v1856_v26  ;;  %v2317_v15 = vld [vmem:[%s3134_s5 + $0xec] sm:$0xf0]  ;;  %v1982_v16 = vld [vmem:[%s3134_s5 + $0xc0] sm:$0xf]  ;;  %vm650_vm5 = vcmask 908288   ;;  %s2486_s25 = smov 84  }
  0x15   : > { %532 = vmatpush.bf16.msra.mxu3 %v472_v21  ;;  %v481_v31 = vand.u32 %v1865_v22, %v461_v2  ;;  %v484_v32 = vand.u32 %v1869_v23, %v461_v2  ;;  %v1999_v19 = vor.u32 %v2317_v15, %v1998_v14  ;;  %v2313_v20 = vld [vmem:[%s3134_s5 + $0xcc] sm:$0xf0]  ;;  %v2062_v25 = vld [vmem:[%s3134_s5 + $0x160] sm:$0xf]  ;;  %vm666_vm6 = vcmask 793600   ;;  %s2487_s26 = smov 48  }
  0x16   : > { %v478_v34 = vand.u32 %v1861_v29, %v461_v2  ;;  %v475_v35 = vand.u32 %v1857_v33, %v461_v2  ;;  %v1983_v24 = vor.u32 %v2313_v20, %v1982_v16  ;;  %v2333_v26 = vld [vmem:[%s3134_s5 + $0x16c] sm:$0xf0]  ;;  %v1966_v29 = vld [vmem:[%s3134_s5 + $0xa0] sm:$0xf]  ;;  %vm658_vm7 = vcmask 801792   ;;  %s2488_s27 = smov 28  }
  0x17   : > { %1870 = vmatmul.msk.bf16.vlgmr.msra.gmra.mxu1 %vm454_vm2, %v421_v27  ;;  %1872 = vmatmul.msk.bf16.vlgmr.msra.gmra.mxu2 %vm454_vm2, %v421_v27  ;;  %v2309_v30 = vld [vmem:[%s3134_s5 + $0xac] sm:$0xf0]  ;;  %v2046_v33 = vld [vmem:[%s3134_s5 + $0x140] sm:$0xf]  ;;  %vm683_vm8 = vcmask 1041408   ;;  %vm634_vm9 = vcmask 924672  }
  0x18   : > { %506 = vmatpush.bf16.msrb.mxu1 %v466_v28  ;;  %571 = vmatpush.bf16.msrb.mxu2 %v481_v31  ;;  %v2063_v31 = vor.u32 %v2333_v26, %v2062_v25  ;;  %v1967_v36 = vor.u32 %v2309_v30, %v1966_v29  ;;  %v2297_v14 = vld [vmem:[%s3134_s5 + $0x4c] sm:$0xf0]  ;;  %vm624_vm10 = vcmask 1031168   ;;  %vm642_vm11 = vcmask 916480   ;;  %s2489_s28 = smov 68  }
  0x19   : > { %1873 = vmatmul.msk.bf16.vlgmr.msra.gmra.mxu3 %vm454_vm2, %v421_v27  ;;  %545 = vmatpush.bf16.msra.mxu0 %v475_v35  ;;  %v2329_v35 = vld [vmem:[%s3134_s5 + $0x14c] sm:$0xf0]  ;;  %vm614_vm12 = vcmask 1039360   ;;  %vm678_vm13 = vcmask 1045504   ;;  %vm707_vm14 = vcmask 441344   ;;  %vm1036_vm15 = vcmask 523264  }
  0x1a   : > { %584 = vmatpush.bf16.msrb.mxu3 %v484_v32  ;;  %vm1235_vm1 = vcmask 293888  }
  0x1c   : > { %558 = vmatpush.bf16.msra.mxu1 %v478_v34  ;;  %1874 = vmatmul.msk.bf16.vlgmr.msra.gmra.mxu0 %vm454_vm2, %v421_v27 }
  0x1d   : > { %1040 = vmatpush.bf16.msra.mxu2 %v1999_v19 }
  0x1e   : > { %1058 = vmatpush.bf16.msra.mxu3 %v2063_v31 }
  0x21   : > { %1041 = vmatpush.bf16.msra.mxu2 %v1983_v24  ;;  %v2293_v24 = vld [vmem:[%s3134_s5 + $0x2c] sm:$0xf0] }
  0x25   : > { %1042 = vmatpush.bf16.msra.mxu2 %v1967_v36 }
  0x27   : > { %1871 = vmatmul.msk.bf16.vlgmr.msrb.gmra.mxu1 %vm454_vm2, %v421_v27  ;;  %1876 = vmatmul.msk.bf16.vlgmr.msrb.gmra.mxu2 %vm454_vm2, %v421_v27 }
  0x29   : > { %1877 = vmatmul.msk.bf16.vlgmr.msrb.gmra.mxu3 %vm454_vm2, %v421_v27 }
  0x37   : > { %1875 = vmatmul.msk.bf16.vlgmr.msra.gmra.mxu1 %vm454_vm2, %v421_v27  ;;  %vm1237_vm2 = vcmask 588800  }
  0x80   : > { %v600_v53 = vpop.permute.xlu0 %599 }
  0x94   : > { %v495_v38 = vpop.f32.mrf.mxu1 }
  0x99   : > { %v547_v39 = vpop.f32.mrf.mxu0 }
  0x9a   : > { %v521_v40 = vpop.f32.mrf.mxu2 }
  0x9b   : > { %v590_v51 = vmax.f32 %v495_v38, %v521_v40  ;;  %v2047_v38 = vor.u32 %v2329_v35, %v2046_v33  ;;  %v2064_v33 = vld [vmem:[%s3134_s5 + $0x170] sm:$0xf0] }
  0x9c   : > { %v534_v41 = vpop.f32.mrf.mxu3  ;;  %v497_v42 = vpop.f32.mrf.mxu1 }
  0x9d   : > { %1059 = vmatpush.bf16.msra.mxu3 %v2047_v38  ;;  %v2000_v38 = vld [vmem:[%s3134_s5 + $0xf0] sm:$0xf0] }
  0xa1   : > { %v549_v43 = vpop.f32.mrf.mxu0 }
  0xa2   : > { %v523_v44 = vpop.f32.mrf.mxu2  ;;  %v2305_v43 = vld [vmem:[%s3134_s5 + $0x8c] sm:$0xf0] }
  0xa3   : > { %v2030_v44 = vld [vmem:[%s3134_s5 + $0x120] sm:$0xf] }
  0xa4   : > { %v536_v45 = vpop.f32.mrf.mxu3  ;;  %v508_v46 = vpop.f32.mrf.mxu1 }
  0xa5   : > { %v591_v58 = vmax.f32 %v508_v46, %v534_v41  ;;  %v2325_v45 = vld [vmem:[%s3134_s5 + $0x12c] sm:$0xf0] }
  0xaa   : > { %v573_v47 = vpop.f32.mrf.mxu2 }
  0xab   : > { %v592_v49 = vmax.f32 %v547_v39, %v573_v47  ;;  %v1934_v47 = vld [vmem:[%s3134_s5 + $0x60] sm:$0xf] }
  0xac   : > { %v586_v48 = vpop.f32.mrf.mxu3  ;;  %v510_v50 = vpop.f32.mrf.mxu1 }
  0xad   : > { %v594_v52 = vmax.f32 %v590_v51, %v592_v49  ;;  %v2031_v49 = vor.u32 %v2325_v45, %v2030_v44  ;;  %v2316_v44 = vld [vmem:[%s3134_s5 + $0xec] sm:$0xf] }
  0xaf   : > { %v602_v56 = vadd.f32 %v600_v53, %v594_v52  ;;  %v1951_v52 = vor.u32 %v2305_v43, %v1950_v37  ;;  %1060 = vmatpush.bf16.msra.mxu3 %v2031_v49  ;;  %v2315_v37 = vld [vmem:[%s3134_s5 + $0xe4] sm:$0xf] }
  0xb0   : > { %v2311_v49 = vld [vmem:[%s3134_s5 + $0xc4] sm:$0xf] }
  0xb1   : > { %v2603_v61 = vmax.f32 %v602_v56, 0.0  ;;  %1043 = vmatpush.bf16.msra.mxu2 %v1951_v52 }
  0xb2   : > { %v575_v54 = vpop.f32.mrf.mxu2 }
  0xb3   : > { %v628_v1 = vrot.slane %v2603_v61, 6  ;;  %v608_v4 = vrot.slane %v2603_v61, 2  ;;  %v618_v9 = vrot.slane %v2603_v61, 4  ;;  %v2321_v54 = vld [vmem:[%s3134_s5 + $0x10c] sm:$0xf0] }
  0xb4   : > { %v588_v55 = vpop.f32.mrf.mxu3  ;;  %v560_v57 = vpop.f32.mrf.mxu1 }
  0xb5   : > { %v593_v59 = vmax.f32 %v560_v57, %v586_v48  ;;  %v2301_v48 = vld [vmem:[%s3134_s5 + $0x6c] sm:$0xf0] }
  0xb7   : > { %v595_v60 = vmax.f32 %v591_v58, %v593_v59  ;;  %v2006_v58 = vld [vmem:[%s3134_s5 + $0xe8] sm:$0xf]  ;;  %v2318_v59 = vld [vmem:[%s3134_s5 + $0xf4] sm:$0xf0] }
  0xb9   : > { %v603_v62 = vadd.f32 %v600_v53, %v595_v60  ;;  %v2014_v53 = vld [vmem:[%s3134_s5 + $0x100] sm:$0xf] }
  0xbb   : > { %v2605_v63 = vmax.f32 %v603_v62, 0.0 }
  0xbc   : > { %v562_v0 = vpop.f32.mrf.mxu1 }
  0xbd   : > { %v2417_v2 = vpack.i.bf16 %v2605_v63, %v2603_v61  ;;  %v629_v3 = vrot.slane %v2605_v63, 6  ;;  %v609_v5 = vrot.slane %v2605_v63, 2  ;;  %v619_v8 = vrot.slane %v2605_v63, 4 }
  0xbf   : > { %2418 = vrot.lane.b32.xlu0 %v2417_v2, %s2468_s13  ;;  %v2432_v6 = vpack.i.bf16 %v629_v3, %v628_v1  ;;  %v2422_v7 = vpack.i.bf16 %v609_v5, %v608_v4  ;;  %v2437_v10 = vpack.i.bf16 %v619_v8, %v618_v9  ;;  %v1935_v1 = vor.u32 %v2301_v48, %v1934_v47  ;;  %v2286_v48 = vld [vmem:[%s3132_s3] sm:$0xff]  ;;  %s2478_s13 = smov 36  }
  0xc1   : > { %2433 = vrot.lane.b32.xlu2 %v2432_v6, %s2469_s14  ;;  %2423 = vrot.lane.b32.xlu1 %v2422_v7, %s2470_s15 }
  0xc2   : > { %1044 = vmatpush.bf16.msra.mxu2 %v1935_v1  ;;  %v2327_v1 = vld [vmem:[%s3134_s5 + $0x144] sm:$0xf] }
  0xc7   : > { %2443 = vrot.lane.b32.xlu0 %v2432_v6, %s2471_s16  ;;  %v2015_v6 = vor.u32 %v2321_v54, %v2014_v53  ;;  %v2307_v54 = vld [vmem:[%s3134_s5 + $0xa4] sm:$0xf]  ;;  %s2479_s16 = smov 88  }
  0xc9   : > { %2438 = vrot.lane.b32.xlu2 %v2437_v10, %s2472_s17  ;;  %2428 = vrot.lane.b32.xlu1 %v2437_v10, %s2473_s18  ;;  %v2007_v10 = vor.u32 %v2318_v59, %v2006_v58  ;;  %v1952_v58 = vld [vmem:[%s3134_s5 + $0x90] sm:$0xf0]  ;;  %s2480_s17 = smov 52   ;;  %s2481_s18 = smov 16  }
  0xca   : > { %1061 = vmatpush.bf16.msra.mxu3 %v2015_v6  ;;  %v2295_v6 = vld [vmem:[%s3134_s5 + $0x44] sm:$0xf] }
  0xce   : > { %1096 = vmatpush.bf16.msrb.mxu3 %v2007_v10  ;;  %v2312_v10 = vld [vmem:[%s3134_s5 + $0xcc] sm:$0xf] }
  0xcf   : > { %1162 = vperm.xlu0 %2416, %v1158_v11  }
  0xd1   : > { %2453 = vrot.lane.b32.xlu2 %v2422_v7, %s2474_s23  ;;  %2448 = vrot.lane.b32.xlu1 %v2417_v2, %s2475_s24  ;;  %s2484_s23 = smov 124   ;;  %s2485_s24 = smov 120  }
 0x11b   : > { %v2618_v12 = vpop.permute.xlu2 %2433 }
 0x11c   : > { %v2436_v39 = vunpack.i.h.bf16 %v2618_v12  ;;  %v2435_v40 = vunpack.i.l.bf16 %v2618_v12 }
 0x11e   : > { %v667_v57 = vsel %vm666_vm6, %v2435_v40, %v2436_v39  ;;  %vm1245_vm6 = vcmask 719872  }
 0x123   : > { %v2638_v27 = vpop.permute.xlu2 %2438 }
 0x124   : > { %v2441_v11 = vunpack.i.h.bf16 %v2638_v27  ;;  %v2440_v12 = vunpack.i.l.bf16 %v2638_v27 }
 0x12b   : > { %v2454_v2 = vpop.permute.xlu2 %2453 }
 0x12c   : > { %v2456_v15 = vunpack.i.h.bf16 %v2454_v2  ;;  %v2455_v16 = vunpack.i.l.bf16 %v2454_v2  ;;  %v2048_v2 = vld [vmem:[%s3134_s5 + $0x150] sm:$0xf0] }
 0x12e   : > { %v680_v35 = vsel %vm678_vm13, %v2605_v63, %v2456_v15  ;;  %v682_v36 = vsel %vm458_vm0, %v2456_v15, %v2441_v11  ;;  %v1886_v63 = vld [vmem:[%s3134_s5] sm:$0xf] }
 0x12f   : > { %v693_v45 = vpack.c.bf16 %v682_v36, %v680_v35  ;;  %v1960_v35 = vld [vmem:[%s3134_s5 + $0x98] sm:$0xf0] }
 0x131   : > { %v2419_v13 = vpop.permute.xlu0 %2418 }
 0x132   : > { %v2421_v17 = vunpack.i.h.bf16 %v2419_v13  ;;  %v2420_v18 = vunpack.i.l.bf16 %v2419_v13  ;;  %v1918_v13 = vld [vmem:[%s3134_s5 + $0x40] sm:$0xf] }
 0x133   : > { %v2424_v21 = vpop.permute.xlu1 %2423 }
 0x134   : > { %v699_v22 = vpack.c.bf16 %v2421_v17, %v2421_v17  ;;  %v675_v23 = vsel %vm674_vm3, %v2420_v18, %v2421_v17  ;;  %v2657_v41 = vunpack.i.h.bf16 %v2424_v21  ;;  %v2425_v42 = vunpack.i.l.bf16 %v2424_v21 }
 0x135   : > { %v698_v28 = vpack.c.bf16 %v675_v23, %v675_v23  ;;  %v1919_v21 = vor.u32 %v2297_v14, %v1918_v13  ;;  %v1902_v23 = vld [vmem:[%s3134_s5 + $0x20] sm:$0xf]  ;;  %v2323_v13 = vld [vmem:[%s3134_s5 + $0x124] sm:$0xf]  ;;  %v2032_v14 = vld [vmem:[%s3134_s5 + $0x130] sm:$0xf0] }
 0x136   : > { %v716_v32 = vsel %vm711_vm4, %v699_v22, 0  ;;  %v651_v56 = vsel %vm650_vm5, %v2425_v42, %v2657_v41  ;;  %v625_v22 = vsel %vm624_vm10, %v2440_v12, %v2441_v11  ;;  %v2289_v42 = vld [vmem:[%s3134_s5 + $0xc] sm:$0xf0]  ;;  %vm1239_vm3 = vcmask 883712  }
 0x137   : > { %736 = vmatpush.bf16.msrb.mxu1 %v716_v32  ;;  %v713_v34 = vsel %vm711_vm4, %v698_v28, 0  ;;  %v615_v28 = vsel %vm614_vm12, %v2455_v16, %v2456_v15  ;;  %v2331_v32 = vld [vmem:[%s3134_s5 + $0x164] sm:$0xf]  ;;  %1045 = vmatpush.bf16.msra.mxu2 %v1919_v21  ;;  %v1974_v15 = vld [vmem:[%s3134_s5 + $0xa8] sm:$0xf]  ;;  %v2035_v16 = vor.u32 %v2323_v13, %v2032_v14  ;;  %vm1241_vm4 = vcmask 130048  }
 0x138   : > { %722 = vmatpush.bf16.msrb.mxu0 %v713_v34  ;;  %v679_v40 = vsel %vm678_vm13, %v2603_v61, %v615_v28  ;;  %v2067_v43 = vor.u32 %v2331_v32, %v2064_v33  ;;  %v2008_v61 = vld [vmem:[%s3134_s5 + $0xf8] sm:$0xf0]  ;;  %v2288_v13 = vld [vmem:[%s3134_s5 + $0xc] sm:$0xf]  ;;  %vm1243_vm5 = vcmask 424960   ;;  %vm1257_vm10 = vcmask 392192  }
 0x139   : > { %v2444_v55 = vpop.permute.xlu0 %2443  ;;  %v2011_v52 = vor.u32 %v2316_v44, %v2008_v61  ;;  %v2332_v44 = vld [vmem:[%s3134_s5 + $0x16c] sm:$0xf]  ;;  %v2072_v61 = vld [vmem:[%s3134_s5 + $0x178] sm:$0xf0]  ;;  %vm1261_vm12 = vcmask 982016  }
 0x13a   : > { %v2446_v7 = vunpack.i.h.bf16 %v2444_v55  ;;  %v2445_v8 = vunpack.i.l.bf16 %v2444_v55  ;;  %v1968_v55 = vld [vmem:[%s3134_s5 + $0xb0] sm:$0xf0]  ;;  %v1896_v14 = vld [vmem:[%s3134_s5 + $0x18] sm:$0xf0] }
 0x13b   : > { %v2429_v46 = vpop.permute.xlu1 %2428 }
 0x13c   : > { %v2431_v50 = vunpack.i.h.bf16 %v2429_v46  ;;  %v2430_v51 = vunpack.i.l.bf16 %v2429_v46  ;;  %v635_v20 = vsel %vm634_vm9, %v2445_v8, %v2446_v7  ;;  %v685_v25 = vsel %vm683_vm8, %v2441_v11, %v2446_v7  ;;  %v1920_v7 = vld [vmem:[%s3134_s5 + $0x50] sm:$0xf0]  ;;  %v1992_v11 = vld [vmem:[%s3134_s5 + $0xd8] sm:$0xf0] }
 0x13d   : > { %v684_v30 = vsel %vm683_vm8, %v625_v22, %v635_v20  ;;  %v2003_v46 = vor.u32 %v2315_v37, %v2000_v38  ;;  %v1995_v12 = vor.u32 %v2312_v10, %v1992_v11  ;;  %v1942_v37 = vld [vmem:[%s3134_s5 + $0x68] sm:$0xf]  ;;  %v2302_v38 = vld [vmem:[%s3134_s5 + $0x74] sm:$0xf0]  ;;  %vm1255_vm9 = vcmask 97280  }
 0x13e   : > { %v689_v60 = vsel %vm458_vm0, %v2657_v41, %v2431_v50  ;;  %v691_v62 = vsel %vm683_vm8, %v2431_v50, %v2436_v39  ;;  %v659_v0 = vsel %vm658_vm7, %v2430_v51, %v2431_v50  ;;  %v1903_v39 = vor.u32 %v2293_v24, %v1902_v23  ;;  %v1984_v50 = vld [vmem:[%s3134_s5 + $0xd0] sm:$0xf0]  ;;  %v1976_v23 = vld [vmem:[%s3134_s5 + $0xb8] sm:$0xf0]  ;;  %v2022_v11 = vld [vmem:[%s3134_s5 + $0x108] sm:$0xf] }
 0x13f   : > { %v697_v3 = vpack.c.bf16 %v691_v62, %v689_v60  ;;  %v688_v4 = vsel %vm458_vm0, %v651_v56, %v659_v0  ;;  %v690_v5 = vsel %vm683_vm8, %v659_v0, %v667_v57  ;;  %v1887_v51 = vor.u32 %v2289_v42, %v1886_v63  ;;  %v2303_v57 = vld [vmem:[%s3134_s5 + $0x84] sm:$0xf]  ;;  %v1936_v62 = vld [vmem:[%s3134_s5 + $0x70] sm:$0xf0]  ;;  %v2300_v63 = vld [vmem:[%s3134_s5 + $0x6c] sm:$0xf] }
 0x140   : > { %v696_v9 = vpack.c.bf16 %v690_v5, %v688_v4  ;;  %1046 = vmatpush.bf16.msra.mxu2 %v1903_v39  ;;  %v1987_v53 = vor.u32 %v2311_v49, %v1984_v50  ;;  %v1955_v59 = vor.u32 %v2303_v57, %v1952_v58  ;;  %v2299_v60 = vld [vmem:[%s3134_s5 + $0x64] sm:$0xf]  ;;  %v2051_v4 = vor.u32 %v2327_v1, %v2048_v2  ;;  %v2314_v5 = vld [vmem:[%s3134_s5 + $0xd4] sm:$0xf0]  ;;  %v2054_v49 = vld [vmem:[%s3134_s5 + $0x148] sm:$0xf] }
 0x141   : > { %737 = vmatpush.bf16.msrb.mxu1 %v697_v3  ;;  %v1939_v0 = vor.u32 %v2299_v60, %v1936_v62  ;;  %v1990_v3 = vld [vmem:[%s3134_s5 + $0xc8] sm:$0xf]  ;;  %v1943_v39 = vor.u32 %v2302_v38, %v1942_v37  ;;  %v2056_v57 = vld [vmem:[%s3134_s5 + $0x158] sm:$0xf0]  ;;  %v2294_v60 = vld [vmem:[%s3134_s5 + $0x34] sm:$0xf0] }
 0x142   : > { %723 = vmatpush.bf16.msrb.mxu0 %v696_v9  ;;  %v1991_v8 = vor.u32 %v2314_v5, %v1990_v3  ;;  %v1923_v9 = vor.u32 %v2295_v6, %v1920_v7  ;;  %v1910_v58 = vld [vmem:[%s3134_s5 + $0x28] sm:$0xf]  ;;  %v2292_v1 = vld [vmem:[%s3134_s5 + $0x2c] sm:$0xf]  ;;  %v1912_v2 = vld [vmem:[%s3134_s5 + $0x38] sm:$0xf0] }
 0x143   : > { %v2449_v17 = vpop.permute.xlu1 %2448  ;;  %v2038_v62 = vld [vmem:[%s3134_s5 + $0x128] sm:$0xf]  ;;  %v2324_v3 = vld [vmem:[%s3134_s5 + $0x12c] sm:$0xf]  ;;  %v2040_v6 = vld [vmem:[%s3134_s5 + $0x138] sm:$0xf0] }
 0x144   : > { %v2451_v18 = vunpack.i.h.bf16 %v2449_v17  ;;  %v2450_v19 = vunpack.i.l.bf16 %v2449_v17  ;;  %1047 = vmatpush.bf16.msra.mxu2 %v1887_v51  ;;  %1097 = vmatpush.bf16.msrb.mxu3 %v1991_v8  ;;  %v2310_v17 = vld [vmem:[%s3134_s5 + $0xb4] sm:$0xf0]  ;;  %v1894_v7 = vld [vmem:[%s3134_s5 + $0x8] sm:$0xf]  ;;  %v2043_v10 = vor.u32 %v2324_v3, %v2040_v6  ;;  %vm1247_vm7 = vcmask 1014784  }
 0x145   : > { %v1975_v20 = vor.u32 %v2310_v17, %v1974_v15  ;;  %v2330_v51 = vld [vmem:[%s3134_s5 + $0x154] sm:$0xf0]  ;;  %v2320_v15 = vld [vmem:[%s3134_s5 + $0x10c] sm:$0xf] }
 0x146   : > { %v687_v26 = vsel %vm678_vm13, %v2451_v18, %v2657_v41  ;;  %v643_v27 = vsel %vm642_vm11, %v2450_v19, %v2451_v18  ;;  %v681_v41 = vsel %vm458_vm0, %v615_v28, %v625_v22  ;;  %v2291_v18 = vld [vmem:[%s3134_s5 + $0x24] sm:$0xf]  ;;  %v1904_v19 = vld [vmem:[%s3134_s5 + $0x30] sm:$0xf0]  ;;  %v2308_v22 = vld [vmem:[%s3134_s5 + $0xac] sm:$0xf] }
 0x147   : > { %v695_v29 = vpack.c.bf16 %v687_v26, %v685_v25  ;;  %v686_v31 = vsel %vm678_vm13, %v643_v27, %v651_v56  ;;  %v692_v47 = vpack.c.bf16 %v681_v41, %v679_v40  ;;  %v1971_v56 = vor.u32 %v2307_v54, %v1968_v55  ;;  %v2319_v25 = vld [vmem:[%s3134_s5 + $0x104] sm:$0xf]  ;;  %v2016_v26 = vld [vmem:[%s3134_s5 + $0x110] sm:$0xf0]  ;;  %v1958_v27 = vld [vmem:[%s3134_s5 + $0x88] sm:$0xf] }
 0x148   : > { %v694_v34 = vpack.c.bf16 %v686_v31, %v684_v30  ;;  %1124 = vmatpush.bf16.msrb.mxu2 %v2011_v52  ;;  %v1907_v21 = vor.u32 %v2291_v18, %v1904_v19  ;;  %v1979_v24 = vor.u32 %v2308_v22, %v1976_v23  ;;  %1098 = vmatpush.bf16.msrb.mxu3 %v1975_v20  ;;  %v2287_v30 = vld [vmem:[%s3134_s5 + $0x4] sm:$0xf]  ;;  %v1888_v31 = vld [vmem:[%s3134_s5 + $0x10] sm:$0xf0]  ;;  %v2070_v40 = vld [vmem:[%s3134_s5 + $0x168] sm:$0xf] }
 0x149   : > { %738 = vmatpush.bf16.msrb.mxu1 %v695_v29  ;;  %v2019_v28 = vor.u32 %v2319_v25, %v2016_v26  ;;  %v2306_v29 = vld [vmem:[%s3134_s5 + $0x94] sm:$0xf0]  ;;  %v1891_v33 = vor.u32 %v2287_v30, %v1888_v31  ;;  %v2296_v52 = vld [vmem:[%s3134_s5 + $0x4c] sm:$0xf]  ;;  %v2055_v54 = vor.u32 %v2330_v51, %v2054_v49  ;;  %v1899_v19 = vor.u32 %v2288_v13, %v1896_v14 }
 0x14a   : > { %724 = vmatpush.bf16.msrb.mxu0 %v694_v34  ;;  %v1959_v32 = vor.u32 %v2306_v29, %v1958_v27  ;;  %v2304_v34 = vld [vmem:[%s3134_s5 + $0x8c] sm:$0xf]  ;;  %v2334_v41 = vld [vmem:[%s3134_s5 + $0x174] sm:$0xf0]  ;;  %vm1259_vm11 = vcmask 687104   ;;  %vm1249_vm13 = vcmask 261120  }
 0x14b   : > { %v1963_v36 = vor.u32 %v2304_v34, %v1960_v35  ;;  %v2071_v42 = vor.u32 %v2334_v41, %v2070_v40  ;;  %v2290_v8 = vld [vmem:[%s3134_s5 + $0x14] sm:$0xf0] }
 0x14c   : > { %1125 = vmatpush.bf16.msrb.mxu2 %v1995_v12  ;;  %1099 = vmatpush.bf16.msrb.mxu3 %v1959_v32  ;;  %v2322_v12 = vld [vmem:[%s3134_s5 + $0x114] sm:$0xf0]  ;;  %v1895_v17 = vor.u32 %v2290_v8, %v1894_v7 }
 0x14d   : > { %739 = vmatpush.bf16.msrb.mxu1 %v693_v45  ;;  %v2023_v18 = vor.u32 %v2322_v12, %v2022_v11 }
 0x14e   : > { %725 = vmatpush.bf16.msrb.mxu0 %v692_v47  ;;  %v1926_v47 = vld [vmem:[%s3134_s5 + $0x48] sm:$0xf] }
 0x150   : > { %1883 = vmatmul.msk.bf16.vlgmr.msrb.gmra.mxu1 %vm707_vm14, %v2286_v48  ;;  %1126 = vmatpush.bf16.msrb.mxu2 %v1979_v24 }
 0x151   : > { %1086 = vmatpush.bf16.msra.mxu1 %v2067_v43  ;;  %1882 = vmatmul.msk.bf16.vlgmr.msrb.gmra.mxu0 %vm707_vm14, %v2286_v48  ;;  %v1944_v43 = vld [vmem:[%s3134_s5 + $0x78] sm:$0xf0]  ;;  %v2298_v48 = vld [vmem:[%s3134_s5 + $0x54] sm:$0xf0]  ;;  %vm1263_vm14 = vcmask 228352  }
 0x152   : > { %1068 = vmatpush.bf16.msra.mxu0 %v2003_v46  ;;  %v1947_v45 = vor.u32 %v2300_v63, %v1944_v43  ;;  %v2075_v46 = vor.u32 %v2332_v44, %v2072_v61  ;;  %1100 = vmatpush.bf16.msrb.mxu3 %v1943_v39  ;;  %v1927_v50 = vor.u32 %v2298_v48, %v1926_v47 }
 0x154   : > { %1127 = vmatpush.bf16.msrb.mxu2 %v1963_v36 }
 0x155   : > { %1087 = vmatpush.bf16.msra.mxu1 %v2051_v4  ;;  %v1911_v4 = vor.u32 %v2294_v60, %v1910_v58 }
 0x156   : > { %1069 = vmatpush.bf16.msra.mxu0 %v1987_v53  ;;  %v1928_v53 = vld [vmem:[%s3134_s5 + $0x58] sm:$0xf0]  ;;  %1101 = vmatpush.bf16.msrb.mxu3 %v1927_v50 }
 0x157   : > { %v1931_v55 = vor.u32 %v2296_v52, %v1928_v53 }
 0x158   : > { %1128 = vmatpush.bf16.msrb.mxu2 %v1947_v45  ;;  %v1163_v45 = vpop.permute.xlu0 %1162 }
 0x159   : > { %1088 = vmatpush.bf16.msra.mxu1 %v2035_v16  ;;  %v2024_v16 = vld [vmem:[%s3134_s5 + $0x118] sm:$0xf0] }
 0x15a   : > { %1070 = vmatpush.bf16.msra.mxu0 %v1971_v56  ;;  %v2328_v56 = vld [vmem:[%s3134_s5 + $0x14c] sm:$0xf]  ;;  %1102 = vmatpush.bf16.msrb.mxu3 %v1911_v4  ;;  %v2027_v20 = vor.u32 %v2320_v15, %v2024_v16  ;;  %v2341_v15 = vld [vmem:[%s3135_s6 + $0x30] sm:$0xff]  ;;  %v2350_v16 = vld [vmem:[%s3135_s6 + $0x78] sm:$0xff] }
 0x15c   : > { %1129 = vmatpush.bf16.msrb.mxu2 %v1931_v55 }
 0x15d   : > { %1089 = vmatpush.bf16.msra.mxu1 %v2019_v28 }
 0x15e   : > { %1071 = vmatpush.bf16.msra.mxu0 %v1955_v59  ;;  %v2059_v59 = vor.u32 %v2328_v56, %v2056_v57  ;;  %1103 = vmatpush.bf16.msrb.mxu3 %v1895_v17  ;;  %v2340_v17 = vld [vmem:[%s3135_s6 + $0x28] sm:$0xff] }
 0x161   : > { %1114 = vmatpush.bf16.msrb.mxu1 %v2071_v42 }
 0x162   : > { %1072 = vmatpush.bf16.msra.mxu0 %v1939_v0  ;;  %v2326_v0 = vld [vmem:[%s3134_s5 + $0x134] sm:$0xf0] }
 0x163   : > { %v2039_v5 = vor.u32 %v2326_v0, %v2038_v62  ;;  %v2342_v62 = vld [vmem:[%s3135_s6 + $0x38] sm:$0xff] }
 0x165   : > { %1115 = vmatpush.bf16.msrb.mxu1 %v2055_v54 }
 0x166   : > { %1073 = vmatpush.bf16.msra.mxu0 %v1923_v9  ;;  %v1915_v9 = vor.u32 %v2292_v1, %v1912_v2 }
 0x168   : > { %1130 = vmatpush.bf16.msrb.mxu2 %v1915_v9 }
 0x169   : > { %1116 = vmatpush.bf16.msrb.mxu1 %v2039_v5 }
 0x16a   : > { %1074 = vmatpush.bf16.msra.mxu0 %v1907_v21  ;;  %v1159_v21 = vld [vmem:[%s3133_s4 + $0x8] sm:$0xff] }
 0x16b   : > { %1167 = vperm.xlu1 %2457, %v1159_v21   ;;  %v2348_v21 = vld [vmem:[%s3135_s6 + $0x68] sm:$0xff] }
 0x16c   : > { %1131 = vmatpush.bf16.msrb.mxu2 %v1899_v19  ;;  %v2349_v19 = vld [vmem:[%s3135_s6 + $0x70] sm:$0xff] }
 0x16d   : > { %1117 = vmatpush.bf16.msrb.mxu1 %v2023_v18  ;;  %v2339_v18 = vld [vmem:[%s3135_s6 + $0x20] sm:$0xff] }
 0x16e   : > { %1075 = vmatpush.bf16.msra.mxu0 %v1891_v33 }
 0x172   : > { %1142 = vmatpush.bf16.msrb.mxu0 %v2075_v46 }
 0x176   : > { %1143 = vmatpush.bf16.msrb.mxu0 %v2059_v59 }
 0x17a   : > { %1144 = vmatpush.bf16.msrb.mxu0 %v2043_v10 }
 0x17e   : > { %1145 = vmatpush.bf16.msrb.mxu0 %v2027_v20  ;;  %v2338_v20 = vld [vmem:[%s3135_s6 + $0x18] sm:$0xff] }
 0x1cd   : > { %v741_v22 = vpop.f32.mrf.mxu1 }
 0x1ce   : > { %v727_v23 = vpop.f32.mrf.mxu0 }
 0x1d5   : > { %v743_v24 = vpop.f32.mrf.mxu1 }
 0x1d6   : > { %v747_v25 = vpack.c.bf16 %v743_v24, %v741_v22  ;;  %v729_v26 = vpop.f32.mrf.mxu0  ;;  %v2337_v22 = vld [vmem:[%s3135_s6 + $0x10] sm:$0xff]  ;;  %v2366_v24 = vld [vmem:[%s3135_s6 + $0xf8] sm:$0xff] }
 0x1d7   : > { %v746_v27 = vpack.c.bf16 %v729_v26, %v727_v23  ;;  %v2347_v23 = vld [vmem:[%s3135_s6 + $0x60] sm:$0xff]  ;;  %v2346_v26 = vld [vmem:[%s3135_s6 + $0x58] sm:$0xff] }
 0x1d8   : > { %2076 = vmatmul.msk.bf16.vlgmr.msra.gmra.mxu3 %vm1036_vm15, %v747_v25  ;;  %2077 = vmatmul.msk.bf16.vlgmr.msra.gmra.mxu1 %vm1036_vm15, %v747_v25 }
 0x1d9   : > { %1048 = vmatmul.bf16.vlgmr.msra.gmra.mxu2 %v746_v27  ;;  %1076 = vmatmul.bf16.vlgmr.msra.gmra.mxu0 %v746_v27 }
 0x1da   : > { %1562 = vmatpush.bf16.msra.mxu1 %v2342_v62  ;;  %1575 = vmatpush.bf16.msra.mxu3 %v2350_v16 }
 0x1db   : > { %1601 = vmatpush.bf16.msra.mxu2 %v2366_v24 }
 0x1dd   : > { %v1168_v1 = vpop.permute.xlu1 %1167 }
 0x1de   : > { %1563 = vmatpush.bf16.msra.mxu1 %v2341_v15  ;;  %1576 = vmatpush.bf16.msra.mxu3 %v2349_v19 }
 0x1e2   : > { %1564 = vmatpush.bf16.msra.mxu1 %v2340_v17  ;;  %1577 = vmatpush.bf16.msra.mxu3 %v2348_v21  ;;  %v1643_v21 = vld [vmem:[%s3137_s8 + $0x38] sm:$0xf] }
 0x1e6   : > { %1565 = vmatpush.bf16.msra.mxu1 %v2339_v18  ;;  %1578 = vmatpush.bf16.msra.mxu3 %v2347_v23 }
 0x1e8   : > { %1104 = vmatmul.bf16.vlgmr.msrb.gmra.mxu3 %v746_v27  ;;  %2078 = vmatmul.msk.bf16.vlgmr.msrb.gmra.mxu1 %vm1036_vm15, %v747_v25 }
 0x1e9   : > { %1132 = vmatmul.bf16.vlgmr.msrb.gmra.mxu2 %v746_v27  ;;  %2079 = vmatmul.msk.bf16.vlgmr.msrb.gmra.mxu0 %vm1036_vm15, %v747_v25  ;;  %v2336_v25 = vld [vmem:[%s3135_s6 + $0x8] sm:$0xff]  ;;  %v2335_v27 = vld [vmem:[%s3135_s6] sm:$0xff] }
 0x1ea   : > { %1566 = vmatpush.bf16.msra.mxu1 %v2338_v20  ;;  %1579 = vmatpush.bf16.msra.mxu3 %v2346_v26  ;;  %v2376_v26 = vld [vmem:[%s3137_s8 + $0x28] sm:$0xff] }
 0x1ee   : > { %1567 = vmatpush.bf16.msra.mxu1 %v2337_v22  ;;  %v1674_v22 = vunpack.c.l.b16 %v1643_v21 }
 0x1f0   : > { %v1682_v23 = vpack.c.b16 %v1674_v22, %v1674_v22 }
 0x1f2   : > { %1568 = vmatpush.bf16.msra.mxu1 %v2336_v25  ;;  %v1694_v24 = vsel %vm458_vm0, %v1682_v23, 0  ;;  %v2377_v25 = vld [vmem:[%s3137_s8 + $0x30] sm:$0xff] }
 0x1f6   : > { %1569 = vmatpush.bf16.msra.mxu1 %v2335_v27  ;;  %v2375_v27 = vld [vmem:[%s3137_s8 + $0x20] sm:$0xff] }
 0x255   : > { %v1091_v28 = vpop.f32.mrf.mxu1 }
 0x256   : > { %v1077_v29 = vpop.f32.mrf.mxu0 }
 0x257   : > { %v1092_v63 = vadd.f32 %v1091_v28, %v1077_v29  ;;  %v2365_v28 = vld [vmem:[%s3135_s6 + $0xf0] sm:$0xff] }
 0x258   : > { %v2345_v29 = vld [vmem:[%s3135_s6 + $0x50] sm:$0xff]  ;;  %1602 = vmatpush.bf16.msra.mxu2 %v2365_v28  ;;  %v2374_v28 = vld [vmem:[%s3137_s8 + $0x18] sm:$0xff] }
 0x259   : > { %1580 = vmatpush.bf16.msra.mxu3 %v2345_v29  ;;  %v2373_v29 = vld [vmem:[%s3137_s8 + $0x10] sm:$0xff] }
 0x25b   : > { %v1063_v30 = vpop.f32.mrf.mxu3 }
 0x25c   : > { %v1049_v31 = vpop.f32.mrf.mxu2 }
 0x25d   : > { %v1093_v32 = vpop.f32.mrf.mxu1  ;;  %v1064_v38 = vadd.f32 %v1063_v30, %v1049_v31  ;;  %v2358_v30 = vld [vmem:[%s3135_s6 + $0xb8] sm:$0xff]  ;;  %v2364_v31 = vld [vmem:[%s3135_s6 + $0xe8] sm:$0xff] }
 0x25e   : > { %v1079_v33 = vpop.f32.mrf.mxu0  ;;  %1588 = vmatpush.bf16.msra.mxu0 %v2358_v30  ;;  %1603 = vmatpush.bf16.msra.mxu2 %v2364_v31  ;;  %v2372_v31 = vld [vmem:[%s3137_s8 + $0x8] sm:$0xff] }
 0x25f   : > { %v1152_v43 = vmax.f32 %v1064_v38, %v1092_v63  ;;  %v1094_v55 = vadd.f32 %v1093_v32, %v1079_v33  ;;  %v2344_v32 = vld [vmem:[%s3135_s6 + $0x48] sm:$0xff]  ;;  %v2357_v33 = vld [vmem:[%s3135_s6 + $0xb0] sm:$0xff]  ;;  %v2355_v38 = vld [vmem:[%s3135_s6 + $0xa0] sm:$0xff] }
 0x260   : > { %1581 = vmatpush.bf16.msra.mxu3 %v2344_v32  ;;  %v2360_v63 = vld [vmem:[%s3135_s6 + $0xc8] sm:$0xff]  ;;  %v2371_v32 = vld [vmem:[%s3137_s8] sm:$0xff] }
 0x262   : > { %1589 = vmatpush.bf16.msra.mxu0 %v2357_v33 }
 0x263   : > { %v1065_v34 = vpop.f32.mrf.mxu3 }
 0x264   : > { %v1051_v35 = vpop.f32.mrf.mxu2 }
 0x265   : > { %v1119_v36 = vpop.f32.mrf.mxu1  ;;  %v1066_v52 = vadd.f32 %v1065_v34, %v1051_v35  ;;  %v2363_v34 = vld [vmem:[%s3135_s6 + $0xe0] sm:$0xff] }
 0x266   : > { %v1147_v37 = vpop.f32.mrf.mxu0  ;;  %v2343_v35 = vld [vmem:[%s3135_s6 + $0x40] sm:$0xff]  ;;  %1604 = vmatpush.bf16.msra.mxu2 %v2363_v34  ;;  %v1721_v34 = vld [vmem:[%s3139_s10 + $0x28] sm:$0x3] }
 0x267   : > { %v1153_v60 = vmax.f32 %v1066_v52, %v1094_v55  ;;  %1582 = vmatpush.bf16.msra.mxu3 %v2343_v35  ;;  %v1744_v35 = vunpack.c.l.b16 %v1721_v34 }
 0x26b   : > { %v1105_v39 = vpop.f32.mrf.mxu3  ;;  %1696 = vmatpush.bf16.msrb.mxu3 %v1694_v24 }
 0x26c   : > { %v1120_v40 = vadd.f32 %v1119_v36, %v1105_v39  ;;  %v1133_v41 = vpop.f32.mrf.mxu2  ;;  %v2356_v36 = vld [vmem:[%s3135_s6 + $0xa8] sm:$0xff]  ;;  %v2361_v39 = vld [vmem:[%s3135_s6 + $0xd0] sm:$0xff] }
 0x26d   : > { %v1148_v42 = vadd.f32 %v1147_v37, %v1133_v41  ;;  %v1121_v47 = vpop.f32.mrf.mxu1  ;;  %v2362_v37 = vld [vmem:[%s3135_s6 + $0xd8] sm:$0xff]  ;;  %1590 = vmatpush.bf16.msra.mxu0 %v2356_v36  ;;  %v1750_v36 = vpack.c.b16 %v1744_v35, %v1744_v35 }
 0x26e   : > { %v1149_v49 = vpop.f32.mrf.mxu0  ;;  %1605 = vmatpush.bf16.msra.mxu2 %v2362_v37  ;;  %v2354_v41 = vld [vmem:[%s3135_s6 + $0x98] sm:$0xff] }
 0x26f   : > { %v1154_v44 = vmax.f32 %v1120_v40, %v1148_v42  ;;  %v2370_v40 = vld [vmem:[%s3135_s6 + $0x118] sm:$0xff]  ;;  %1697 = vmatpush.bf16.msrb.mxu3 %v2377_v25 }
 0x270   : > { %1618 = vmatpush.bf16.msrb.mxu1 %v2370_v40  ;;  %v2381_v40 = vld [vmem:[%s3139_s10 + $0x18] sm:$0xff] }
 0x271   : > { %v1156_v61 = vmax.f32 %v1152_v43, %v1154_v44  ;;  %1591 = vmatpush.bf16.msra.mxu0 %v2355_v38  ;;  %v2369_v43 = vld [vmem:[%s3135_s6 + $0x110] sm:$0xff]  ;;  %v1760_v38 = vsel %vm683_vm8, %v1750_v36, 0 }
 0x272   : > { %1606 = vmatpush.bf16.msra.mxu2 %v2361_v39  ;;  %v2353_v44 = vld [vmem:[%s3135_s6 + $0x90] sm:$0xff]  ;;  %v2382_v39 = vld [vmem:[%s3139_s10 + $0x20] sm:$0xff] }
 0x273   : > { %v1170_v46 = vadd.f32 %v1163_v45, %v1156_v61  ;;  %v1107_v48 = vpop.f32.mrf.mxu3  ;;  %v2359_v61 = vld [vmem:[%s3135_s6 + $0xc0] sm:$0xff]  ;;  %v2368_v45 = vld [vmem:[%s3135_s6 + $0x108] sm:$0xff]  ;;  %1698 = vmatpush.bf16.msrb.mxu3 %v2376_v26 }
 0x274   : > { %v1122_v50 = vadd.f32 %v1121_v47, %v1107_v48  ;;  %v1135_v51 = vpop.f32.mrf.mxu2  ;;  %1619 = vmatpush.bf16.msrb.mxu1 %v2369_v43 }
 0x275   : > { %v2946_v53 = vmax.f32 %v1170_v46, 0.0  ;;  %v1150_v54 = vadd.f32 %v1149_v49, %v1135_v51  ;;  %1592 = vmatpush.bf16.msra.mxu0 %v2354_v41  ;;  %v2352_v46 = vld [vmem:[%s3135_s6 + $0x88] sm:$0xff]  ;;  %v2367_v51 = vld [vmem:[%s3135_s6 + $0x100] sm:$0xff] }
 0x276   : > { %1607 = vmatpush.bf16.msra.mxu2 %v2360_v63  ;;  %v2380_v63 = vld [vmem:[%s3139_s10 + $0x10] sm:$0xff] }
 0x277   : > { %v1155_v56 = vmax.f32 %v1122_v50, %v1150_v54  ;;  %v1183_v57 = vrot.slane %v2946_v53, 3  ;;  %v1179_v58 = vrot.slane %v2946_v53, 2  ;;  %v1175_v59 = vrot.slane %v2946_v53, 1  ;;  %v2351_v54 = vld [vmem:[%s3135_s6 + $0x80] sm:$0xff]  ;;  %1699 = vmatpush.bf16.msrb.mxu3 %v2375_v27 }
 0x278   : > { %v1195_v3 = vrot.slane %v2946_v53, 6  ;;  %v1191_v4 = vrot.slane %v2946_v53, 5  ;;  %v1187_v5 = vrot.slane %v2946_v53, 4  ;;  %v1199_v9 = vrot.slane %v2946_v53, 7  ;;  %1620 = vmatpush.bf16.msrb.mxu1 %v2368_v45 }
 0x279   : > { %1184 = vrot.lane.b32.xlu1 %v1183_v57, %s2476_s29  ;;  %1180 = vrot.lane.b32.xlu0 %v1179_v58, %s2477_s30  ;;  %v1157_v0 = vmax.f32 %v1153_v60, %v1155_v56  ;;  %s2490_s29 = smov 32  }
 0x27a   : > { %1176 = vrot.lane.b32.xlu2 %v1175_v59, %s2478_s13  ;;  %1593 = vmatpush.bf16.msra.mxu0 %v2353_v44 }
 0x27b   : > { %v1171_v2 = vadd.f32 %v1168_v1, %v1157_v0  ;;  %1608 = vmatpush.bf16.msra.mxu2 %v2359_v61  ;;  %1700 = vmatpush.bf16.msrb.mxu3 %v2374_v28 }
 0x27c   : > { %1621 = vmatpush.bf16.msrb.mxu1 %v2367_v51 }
 0x27d   : > { %v1173_v6 = vmax.f32 %v1171_v2, 0.0 }
 0x27e   : > { %1594 = vmatpush.bf16.msra.mxu0 %v2352_v46 }
 0x27f   : > { %v1215_v7 = vrot.slane %v1173_v6, 3  ;;  %v1211_v8 = vrot.slane %v1173_v6, 2  ;;  %v1227_v10 = vrot.slane %v1173_v6, 6  ;;  %v1223_v11 = vrot.slane %v1173_v6, 5  ;;  %1701 = vmatpush.bf16.msrb.mxu3 %v2373_v29 }
 0x280   : > { %v1219_v12 = vrot.slane %v1173_v6, 4  ;;  %v1231_v13 = vrot.slane %v1173_v6, 7  ;;  %v1207_v14 = vrot.slane %v1173_v6, 1 }
 0x281   : > { %1196 = vrot.lane.b32.xlu1 %v1195_v3, %s2479_s16  ;;  %1192 = vrot.lane.b32.xlu0 %v1191_v4, %s2480_s17 }
 0x282   : > { %1188 = vrot.lane.b32.xlu2 %v1187_v5, %s2481_s18  ;;  %1595 = vmatpush.bf16.msra.mxu0 %v2351_v54 }
 0x283   : > { %1702 = vmatpush.bf16.msrb.mxu3 %v2372_v31 }
 0x286   : > { %1764 = vmatpush.bf16.msrb.mxu0 %v1760_v38 }
 0x287   : > { %1703 = vmatpush.bf16.msrb.mxu3 %v2371_v32 }
 0x289   : > { %1216 = vrot.lane.b32.xlu1 %v1215_v7, %s2482_s19  ;;  %1212 = vrot.lane.b32.xlu0 %v1211_v8, %s2483_s20  ;;  %s1837_s20 = sshll.u32 %s3143_s22, 3 }
 0x28a   : > { %1200 = vrot.lane.b32.xlu2 %v1199_v9, %s2484_s23  ;;  %1765 = vmatpush.bf16.msrb.mxu0 %v2382_v39 }
 0x28e   : > { %1766 = vmatpush.bf16.msrb.mxu0 %v2381_v40 }
 0x291   : > { %1228 = vrot.lane.b32.xlu1 %v1227_v10, %s2485_s24  ;;  %1224 = vrot.lane.b32.xlu0 %v1223_v11, %s2486_s25  ;;  %s411_s25 = scalar_lea.vmem %s3141_s12, %s1837_s20 }
 0x292   : > { %1220 = vrot.lane.b32.xlu2 %v1219_v12, %s2487_s26  ;;  %1767 = vmatpush.bf16.msrb.mxu0 %v2380_v63 }
 0x299   : > { %1232 = vrot.lane.b32.xlu1 %v1231_v13, %s2488_s27  ;;  %1208 = vrot.lane.b32.xlu0 %v1207_v14, %s2489_s28 }
 0x29a   : > { %1204 = vrot.lane.b32.xlu2 %v1173_v6, %s2490_s29 }
 0x2d4   : > { %v1177_v42 = vpop.permute.xlu2 %1176 }
 0x2d5   : > { %v1236_v48 = vsel %vm1235_vm1, %v2946_v53, %v1177_v42  ;;  %vm1251_vm1 = vcmask 556032   ;;  %v1342_v42 = vld [vmem:[%s3136_s7] sm:$0x1] }
 0x2dc   : > { %v1189_v47 = vpop.permute.xlu2 %1188 }
 0x2e4   : > { %v1201_v59 = vpop.permute.xlu2 %1200 }
 0x2eb   : > { %v1185_v49 = vpop.permute.xlu1 %1184  ;;  %v1181_v50 = vpop.permute.xlu0 %1180 }
 0x2ec   : > { %v1238_v52 = vsel %vm1237_vm2, %v1236_v48, %v1181_v50  ;;  %v1242_v53 = vsel %vm1241_vm4, %v1185_v49, %v1189_v47  ;;  %v1221_v4 = vpop.permute.xlu2 %1220  ;;  %vm1253_vm2 = vcmask 850944  }
 0x2ed   : > { %v1240_v55 = vsel %vm1239_vm3, %v1238_v52, %v1185_v49 }
 0x2ee   : > { %v1265_v56 = vpack.c.bf16 %v1240_v55, %v1240_v55 }
 0x2f0   : > { %1570 = vmatmul.bf16.vlgmr.msra.gmra.mxu1 %v1265_v56  ;;  %v2379_v56 = vld [vmem:[%s3139_s10 + $0x8] sm:$0xff] }
 0x2f1   : > { %1768 = vmatpush.bf16.msrb.mxu0 %v2379_v56 }
 0x2f3   : > { %v1197_v57 = vpop.permute.xlu1 %1196  ;;  %v1193_v58 = vpop.permute.xlu0 %1192 }
 0x2f4   : > { %v1244_v60 = vsel %vm1243_vm5, %v1242_v53, %v1193_v58  ;;  %v1205_v12 = vpop.permute.xlu2 %1204  ;;  %v2378_v53 = vld [vmem:[%s3139_s10] sm:$0xff] }
 0x2f5   : > { %v1246_v62 = vsel %vm1245_vm6, %v1244_v60, %v1197_v57  ;;  %v1250_v13 = vsel %vm1249_vm13, %v1201_v59, %v1205_v12  ;;  %1769 = vmatpush.bf16.msrb.mxu0 %v2378_v53  ;;  %v1644_v57 = vld [vmem:[%s3138_s9] sm:$0x1] }
 0x2f6   : > { %v1248_v0 = vsel %vm1247_vm7, %v1246_v62, %v1201_v59 }
 0x2f7   : > { %v1266_v1 = vpack.c.bf16 %v1248_v0, %v1248_v0 }
 0x2f9   : > { %1583 = vmatmul.bf16.vlgmr.msra.gmra.mxu3 %v1266_v1  ;;  %v1722_v1 = vld [vmem:[%s3140_s11] sm:$0x1] }
 0x2fb   : > { %v1217_v2 = vpop.permute.xlu1 %1216  ;;  %v1213_v3 = vpop.permute.xlu0 %1212 }
 0x2fc   : > { %v1256_v5 = vsel %vm1255_vm9, %v1213_v3, %v1217_v2 }
 0x2fd   : > { %v1258_v8 = vsel %vm1257_vm10, %v1256_v5, %v1221_v4 }
 0x303   : > { %v1229_v6 = vpop.permute.xlu1 %1228  ;;  %v1225_v7 = vpop.permute.xlu0 %1224 }
 0x304   : > { %v1260_v9 = vsel %vm1259_vm11, %v1258_v8, %v1225_v7 }
 0x305   : > { %v1262_v10 = vsel %vm1261_vm12, %v1260_v9, %v1229_v6 }
 0x306   : > { %v1268_v11 = vpack.c.bf16 %v1262_v10, %v1262_v10 }
 0x308   : > { %1609 = vmatmul.bf16.vlgmr.msra.gmra.mxu2 %v1268_v11 }
 0x30b   : > { %v1233_v14 = vpop.permute.xlu1 %1232  ;;  %v1209_v15 = vpop.permute.xlu0 %1208 }
 0x30c   : > { %v1264_v16 = vsel %vm1263_vm14, %v1229_v6, %v1233_v14  ;;  %v1252_v17 = vsel %vm1251_vm1, %v1250_v13, %v1209_v15 }
 0x30d   : > { %v1269_v18 = vpack.c.bf16 %v1264_v16, %v1264_v16  ;;  %v1254_v19 = vsel %vm1253_vm2, %v1252_v17, %v1213_v3 }
 0x30e   : > { %v1267_v20 = vpack.c.bf16 %v1254_v19, %v1254_v19 }
 0x30f   : > { %2224 = vmatmul.msk.bf16.vlgmr.msrb.gmra.mxu1 %vm1036_vm15, %v1269_v18 }
 0x310   : > { %1596 = vmatmul.bf16.vlgmr.msra.gmra.mxu0 %v1267_v20 }
 0x36d   : > { %v1571_v30 = vpop.f32.mrf.mxu1 }
 0x36e   : > { %v1572_v43 = vadd.f32 %v1571_v30, %v1342_v42 }
 0x375   : > { %v1573_v33 = vpop.f32.mrf.mxu1 }
 0x37c   : > { %v1584_v37 = vpop.f32.mrf.mxu3 }
 0x37d   : > { %v1585_v61 = vadd.f32 %v1584_v37, %v1572_v43 }
 0x384   : > { %v1586_v41 = vpop.f32.mrf.mxu3 }
 0x38b   : > { %v1610_v44 = vpop.f32.mrf.mxu2 }
 0x38c   : > { %v1623_v45 = vpop.f32.mrf.mxu1 }
 0x38d   : > { %v1597_v46 = vpop.f32.mrf.mxu0 }
 0x38e   : > { %v1598_v47 = vadd.f32 %v1597_v46, %v1585_v61 }
 0x390   : > { %v1611_v48 = vadd.f32 %v1610_v44, %v1598_v47 }
 0x392   : > { %v1624_v49 = vadd.f32 %v1623_v45, %v1611_v48 }
 0x393   : > { %v1612_v50 = vpop.f32.mrf.mxu2 }
 0x394   : > { %v1627_v51 = vmax.f32 %v1624_v49, 0.0  ;;  %v1625_v52 = vpop.f32.mrf.mxu1 }
 0x395   : > { %v1599_v54 = vpop.f32.mrf.mxu0 }
 0x396   : > { %v1628_v55 = vpack.c.bf16 %v1627_v51, %v1627_v51 }
 0x398   : > { %2253 = vmatmul.msk.bf16.vlgmr.msrb.gmra.mxu3 %vm1261_vm12, %v1628_v55 }
 0x41b   : > { %v1705_v58 = vpop.f32.mrf.mxu3 }
 0x41c   : > { %v1706_v59 = vadd.f32 %v1705_v58, %v1644_v57 }
 0x41e   : > { %v1709_v60 = vmax.f32 %v1706_v59, 0.0 }
 0x420   : > { %v1710_v62 = vpack.c.bf16 %v1709_v60, %v1709_v60 }
 0x422   : > { %2274 = vmatmul.msk.bf16.vlgmr.msrb.gmra.mxu0 %vm1259_vm11, %v1710_v62 }
 0x423   : > { %v1707_v0 = vpop.f32.mrf.mxu3 }
 0x49f   : > { %v1771_v2 = vpop.f32.mrf.mxu0 }
 0x4a0   : > { %v1772_v3 = vadd.f32 %v1771_v2, %v1722_v1 }
 0x4a2   : > { %v1775_v4 = vperm.slane %v1772_v3, 0 }
 0x4a4   : > { %1776 = vst [vmem:[%s411_s25] sm:$0xff] %v1775_v4 }
 0x4a7   : > { %v1773_v5 = vpop.f32.mrf.mxu0 }
 0x4a8 PF: > { %s22_s21 = sadd.s32 1, %s2464_s21  }
 0x4a9   : > { %p19_p4 = scmp.ge.s32.totalorder %s22_s21, 4  }
 0x4ab   :  { %21 = sbr.rel (!%p19_p4) target bundleno = 1 (0x1), region = 98 }

</bundles_post_ra>
